<compile_context>
chip_gen: v5e
topology: v5e:2x2
jax: 0.10.0
libtpu: 0.0.40
codegen_flags: <defaults>
</compile_context>

<pallas_src>
import functools

import jax
import jax.numpy as jnp
from jax.experimental import pallas as pl
from jax.experimental.pallas import tpu as pltpu


def _sage_layer_kernel(a_ref, xk_ref, xr_ref, invdeg_ref, w_ref, b_ref,
                       out_ref, acc_ref, *, last_layer, valid_out):
    k = pl.program_id(1)

    @pl.when(k == 0)
    def _():
        acc_ref[...] = jnp.zeros_like(acc_ref)

    # Neighbor-sum partial: (tm, tk) @ (tk, F) on the MXU, f32 accumulation.
    acc_ref[...] += jnp.dot(a_ref[...], xk_ref[...],
                            preferred_element_type=jnp.float32)

    @pl.when(k == pl.num_programs(1) - 1)
    def _():
        agg = acc_ref[...] * invdeg_ref[...]              # mean aggregation, f32 VPU scale
        # Fused neighbor/root matmul: [agg || x_root] @ [W_l ; W_r]
        feats = jnp.concatenate([agg.astype(jnp.bfloat16), xr_ref[...]], axis=-1)
        z = jnp.dot(feats, w_ref[...],
                    preferred_element_type=jnp.float32) + b_ref[...]
        if last_layer:
            # masked log_softmax over the first `valid_out` lanes (rest is padding)
            lane = jax.lax.broadcasted_iota(jnp.int32, z.shape, 1)
            valid = lane < valid_out
            zm = jnp.where(valid, z, -1e30)
            m = jnp.max(zm, axis=1, keepdims=True)
            lse = jnp.log(jnp.sum(jnp.exp(zm - m), axis=1, keepdims=True)) + m
            out_ref[...] = jnp.where(valid, z - lse, 0.0).astype(out_ref.dtype)
        else:
            # relu; F.dropout(p=0.5, training=False) == identity in eval mode.
            out_ref[...] = jnp.maximum(z, 0.0).astype(out_ref.dtype)


def _sage_layer(a_cnt, inv_deg, x, w_stacked, b, *, tm, tk, last_layer,
                valid_out, out_dtype):
    n_pad = a_cnt.shape[0]
    f_in = x.shape[1]
    f_out = w_stacked.shape[1]
    grid = (n_pad // tm, n_pad // tk)

    kernel = functools.partial(_sage_layer_kernel,
                               last_layer=last_layer, valid_out=valid_out)

    flops = 2 * n_pad * n_pad * f_in + 2 * n_pad * (2 * f_in) * f_out
    transcendentals = n_pad * f_out if last_layer else 0
    bytes_accessed = (a_cnt.size * a_cnt.dtype.itemsize
                      + 2 * x.size * x.dtype.itemsize
                      + inv_deg.size * 4
                      + w_stacked.size * w_stacked.dtype.itemsize
                      + b.size * 4
                      + n_pad * f_out * jnp.dtype(out_dtype).itemsize)

    return pl.pallas_call(
        kernel,
        out_shape=jax.ShapeDtypeStruct((n_pad, f_out), out_dtype),
        grid_spec=pltpu.PrefetchScalarGridSpec(
            num_scalar_prefetch=0,
            grid=grid,
            in_specs=[
                pl.BlockSpec((tm, tk), lambda i, k: (i, k)),            # A tile
                pl.BlockSpec((tk, f_in), lambda i, k: (k, 0)),          # X rows (reduction)
                pl.BlockSpec((tm, f_in), lambda i, k: (i, 0)),          # X rows (root term)
                pl.BlockSpec((tm, 1), lambda i, k: (i, 0)),             # 1/deg
                pl.BlockSpec((2 * f_in, f_out), lambda i, k: (0, 0)),   # stacked W (resident)
                pl.BlockSpec((1, f_out), lambda i, k: (0, 0)),          # bias (resident)
            ],
            out_specs=pl.BlockSpec((tm, f_out), lambda i, k: (i, 0)),
            scratch_shapes=[pltpu.VMEM((tm, f_in), jnp.float32)],
        ),
        compiler_params=pltpu.CompilerParams(
            dimension_semantics=("parallel", "arbitrary")),
        cost_estimate=pl.CostEstimate(flops=flops,
                                      transcendentals=transcendentals,
                                      bytes_accessed=bytes_accessed),
    )(a_cnt, x, x, inv_deg, w_stacked, b)


def _round_up(v, m):
    return ((v + m - 1) // m) * m


def _pad2(a, rows, cols):
    return jnp.pad(a, ((0, rows - a.shape[0]), (0, cols - a.shape[1])))


def graphsage_forward(x, edge_index, params):
    n, dim_in = x.shape
    dim_h = params["w1l"].shape[1]
    dim_out = params["w2l"].shape[1]

    # ---- plain-JAX glue: edge-count adjacency, degrees, padding, weight stacking ----
    src, dst = edge_index[0], edge_index[1]
    a_cnt = jnp.zeros((n, n), jnp.float32).at[dst, src].add(1.0)   # counts j->i
    deg = jnp.sum(a_cnt, axis=1, keepdims=True)
    inv_deg = 1.0 / jnp.maximum(deg, 1.0)            # isolated nodes -> zero aggregation

    f_in = _round_up(dim_in, 128)                    # lane-dense feature dims
    f_h = _round_up(dim_h, 128)
    f_out = _round_up(dim_out, 128)
    n_pad = _round_up(n, 8) if n <= 512 else _round_up(n, 512)
    tm = tk = min(512, n_pad)                        # big tiles amortize grid overhead

    a_p = _pad2(a_cnt, n_pad, n_pad).astype(jnp.bfloat16)   # counts exact in bf16
    x_p = _pad2(x, n_pad, f_in).astype(jnp.bfloat16)
    invdeg_p = jnp.pad(inv_deg, ((0, n_pad - n), (0, 0)), constant_values=1.0)

    w1 = jnp.concatenate([_pad2(params["w1l"], f_in, f_h),
                          _pad2(params["w1r"], f_in, f_h)], axis=0).astype(jnp.bfloat16)
    b1 = _pad2(params["b1"], 1, f_h)
    w2 = jnp.concatenate([_pad2(params["w2l"], f_h, f_out),
                          _pad2(params["w2r"], f_h, f_out)], axis=0).astype(jnp.bfloat16)
    b2 = _pad2(params["b2"], 1, f_out)

    # ---- layer 1: SAGEConv + ReLU (+ identity dropout) ----
    h = _sage_layer(a_p, invdeg_p, x_p, w1, b1, tm=tm, tk=tk,
                    last_layer=False, valid_out=f_h, out_dtype=jnp.bfloat16)
    # ---- layer 2: SAGEConv + log_softmax over the valid class lanes ----
    z = _sage_layer(a_p, invdeg_p, h, w2, b2, tm=tm, tk=tk,
                    last_layer=True, valid_out=dim_out, out_dtype=jnp.float32)
    return z[:n, :dim_out]


def init_params(key, dim_in, dim_h, dim_out):
    """Deterministic synthetic init (shapes follow SAGEConv: lin_l has bias, lin_r has none)."""
    ks = jax.random.split(key, 6)

    def glorot(k, fan_in, fan_out):
        lim = (6.0 / (fan_in + fan_out)) ** 0.5
        return jax.random.uniform(k, (fan_in, fan_out), jnp.float32, -lim, lim)

    return {
        "w1l": glorot(ks[0], dim_in, dim_h),
        "w1r": glorot(ks[1], dim_in, dim_h),
        "b1":  jnp.zeros((1, dim_h), jnp.float32),
        "w2l": glorot(ks[2], dim_h, dim_out),
        "w2r": glorot(ks[3], dim_h, dim_out),
        "b2":  jnp.zeros((1, dim_out), jnp.float32),
    }


if __name__ == "__main__":
    N, E = 64, 256
    dim_in, dim_h, dim_out = 32, 32, 8

    key = jax.random.PRNGKey(0)
    kx, ke, kp = jax.random.split(key, 3)

    x = jax.random.normal(kx, (N, dim_in), jnp.float32)
    edge_index = jax.random.randint(ke, (2, E), 0, N, jnp.int32)
    params = init_params(kp, dim_in, dim_h, dim_out)

    out = jax.block_until_ready(graphsage_forward(x, edge_index, params))

    assert out.shape == (N, dim_out)
    # log_softmax rows must sum to ~1 after exp (over the valid class columns)
    row_sums = jnp.exp(out).sum(axis=1)
    assert bool(jnp.all(jnp.abs(row_sums - 1.0) < 1e-4))

    # pure-JAX f32 reference (loose tolerance: kernel feeds bf16 operands to the MXU)
    def ref_forward(xx, ei, p):
        s, d = ei[0], ei[1]
        a = jnp.zeros((N, N), jnp.float32).at[d, s].add(1.0)
        a = a / jnp.maximum(a.sum(1, keepdims=True), 1.0)
        h = jnp.maximum(a @ xx @ p["w1l"] + p["b1"] + xx @ p["w1r"], 0.0)
        zz = a @ h @ p["w2l"] + p["b2"] + h @ p["w2r"]
        return jax.nn.log_softmax(zz, axis=1)

    ref = ref_forward(x, edge_index, params)
    assert bool(jnp.max(jnp.abs(out - ref)) < 0.25)

    print("KERNEL_OK")
</pallas_src>

<mosaic_0001>
module attributes {stable_mosaic.version = 11 : i64} {
  func.func @_sage_layer_kernel(%arg0: i32, %arg1: i32, %arg2: memref<64x64xbf16, #tpu.memory_space<vmem>>, %arg3: memref<64x128xbf16, #tpu.memory_space<vmem>>, %arg4: memref<64x128xbf16, #tpu.memory_space<vmem>>, %arg5: memref<64x1xf32, #tpu.memory_space<vmem>>, %arg6: memref<256x128xbf16, #tpu.memory_space<vmem>>, %arg7: memref<1x128xf32, #tpu.memory_space<vmem>>, %arg8: memref<64x128xbf16, #tpu.memory_space<vmem>>, %arg9: memref<64x128xf32, #tpu.memory_space<vmem>>) attributes {dimension_semantics = [#tpu.dimension_semantics<parallel>, #tpu.dimension_semantics<arbitrary>], iteration_bounds = array<i64: 1, 1>, scalar_prefetch = 0 : i64, scratch_operands = 1 : i64, tpu.core_type = #tpu.core_type<tc>, window_params = [{transform_indices = @transform_0, window_bounds = array<i64: 64, 64>}, {transform_indices = @transform_1, window_bounds = array<i64: 64, 128>}, {transform_indices = @transform_2, window_bounds = array<i64: 64, 128>}, {transform_indices = @transform_3, window_bounds = array<i64: 64, 1>}, {pipeline_mode = #tpu.pipeline_mode<synchronous>, transform_indices = @transform_4, window_bounds = array<i64: 256, 128>}, {pipeline_mode = #tpu.pipeline_mode<synchronous>, transform_indices = @transform_5, window_bounds = array<i64: 1, 128>}, {transform_indices = @transform_6, window_bounds = array<i64: 64, 128>}]} {
    %c0_i32 = arith.constant 0 : i32
    %0 = arith.cmpi eq, %arg1, %c0_i32 : i32
    %1 = arith.extui %0 : i1 to i32
    %c0_i32_0 = arith.constant 0 : i32
    %2 = arith.cmpi ne, %1, %c0_i32_0 : i32
    scf.if %2 {
      %cst_10 = arith.constant 0.000000e+00 : f32
      %12 = vector.broadcast %cst_10 : f32 to vector<64x128xf32>
      %c0_11 = arith.constant 0 : index
      %c0_12 = arith.constant 0 : index
      %13 = vector.load %arg9[%c0_11, %c0_12] : memref<64x128xf32, #tpu.memory_space<vmem>>, vector<64x128xf32>
      tpu.vector_store %arg9[%c0_11, %c0_12], %12 {strides = array<i32>} : memref<64x128xf32, #tpu.memory_space<vmem>>, vector<64x128xf32>,
    } else {
    }
    %c0 = arith.constant 0 : index
    %c0_1 = arith.constant 0 : index
    %3 = vector.load %arg9[%c0, %c0_1] : memref<64x128xf32, #tpu.memory_space<vmem>>, vector<64x128xf32>
    %c0_2 = arith.constant 0 : index
    %c0_3 = arith.constant 0 : index
    %4 = vector.load %arg2[%c0_2, %c0_3] : memref<64x64xbf16, #tpu.memory_space<vmem>>, vector<64x64xbf16>
    %c0_4 = arith.constant 0 : index
    %c0_5 = arith.constant 0 : index
    %5 = vector.load %arg3[%c0_4, %c0_5] : memref<64x128xbf16, #tpu.memory_space<vmem>>, vector<64x128xbf16>
    %cst = arith.constant dense<0.000000e+00> : vector<64x128xf32>
    %6 = tpu.matmul %4, %5, %cst {dimension_numbers = #tpu.dot_dimension_numbers<[1], [0], [0], [1], [0, 0, 1, 1], [], []>} : vector<64x64xbf16>, vector<64x128xbf16>, vector<64x128xf32> -> vector<64x128xf32>
    %7 = arith.addf %3, %6 : vector<64x128xf32>
    %c0_6 = arith.constant 0 : index
    %c0_7 = arith.constant 0 : index
    %8 = vector.load %arg9[%c0_6, %c0_7] : memref<64x128xf32, #tpu.memory_space<vmem>>, vector<64x128xf32>
    tpu.vector_store %arg9[%c0_6, %c0_7], %7 {strides = array<i32>} : memref<64x128xf32, #tpu.memory_space<vmem>>, vector<64x128xf32>,
    %c0_i32_8 = arith.constant 0 : i32
    %9 = arith.cmpi eq, %arg1, %c0_i32_8 : i32
    %10 = arith.extui %9 : i1 to i32
    %c0_i32_9 = arith.constant 0 : i32
    %11 = arith.cmpi ne, %10, %c0_i32_9 : i32
    scf.if %11 {
      %c0_10 = arith.constant 0 : index
      %c0_11 = arith.constant 0 : index
      %12 = vector.load %arg9[%c0_10, %c0_11] : memref<64x128xf32, #tpu.memory_space<vmem>>, vector<64x128xf32>
      %c0_12 = arith.constant 0 : index
      %c0_13 = arith.constant 0 : index
      %13 = vector.load %arg5[%c0_12, %c0_13] : memref<64x1xf32, #tpu.memory_space<vmem>>, vector<64x1xf32>
      %14 = vector.broadcast %13 : vector<64x1xf32> to vector<64x128xf32>
      %15 = arith.mulf %12, %14 : vector<64x128xf32>
      %16 = arith.truncf %15 : vector<64x128xf32> to vector<64x128xbf16>
      %c0_14 = arith.constant 0 : index
      %c0_15 = arith.constant 0 : index
      %17 = vector.load %arg4[%c0_14, %c0_15] : memref<64x128xbf16, #tpu.memory_space<vmem>>, vector<64x128xbf16>
      %18 = tpu.concatenate %16, %17 in 1 : vector<64x128xbf16>, vector<64x128xbf16> -> vector<64x256xbf16>
      %c0_16 = arith.constant 0 : index
      %c0_17 = arith.constant 0 : index
      %19 = vector.load %arg6[%c0_16, %c0_17] : memref<256x128xbf16, #tpu.memory_space<vmem>>, vector<256x128xbf16>
      %cst_18 = arith.constant dense<0.000000e+00> : vector<64x128xf32>
      %20 = tpu.matmul %18, %19, %cst_18 {dimension_numbers = #tpu.dot_dimension_numbers<[1], [0], [0], [1], [0, 0, 1, 1], [], []>} : vector<64x256xbf16>, vector<256x128xbf16>, vector<64x128xf32> -> vector<64x128xf32>
      %c0_19 = arith.constant 0 : index
      %c0_20 = arith.constant 0 : index
      %21 = vector.load %arg7[%c0_19, %c0_20] : memref<1x128xf32, #tpu.memory_space<vmem>>, vector<1x128xf32>
      %22 = vector.broadcast %21 : vector<1x128xf32> to vector<64x128xf32>
      %23 = arith.addf %20, %22 : vector<64x128xf32>
      %cst_21 = arith.constant 0.000000e+00 : f32
      %24 = vector.broadcast %cst_21 : f32 to vector<64x128xf32>
      %25 = arith.maximumf %23, %24 : vector<64x128xf32>
      %26 = arith.truncf %25 : vector<64x128xf32> to vector<64x128xbf16>
      %c0_22 = arith.constant 0 : index
      %c0_23 = arith.constant 0 : index
      %27 = vector.load %arg8[%c0_22, %c0_23] : memref<64x128xbf16, #tpu.memory_space<vmem>>, vector<64x128xbf16>
      tpu.vector_store %arg8[%c0_22, %c0_23], %26 {strides = array<i32>} : memref<64x128xbf16, #tpu.memory_space<vmem>>, vector<64x128xbf16>,
    } else {
    }
    return
  }
  func.func @transform_0(%arg0: i32, %arg1: i32) -> (i32, i32) {
    %c0_i32 = arith.constant 0 : i32
    return %arg0, %arg1 : i32, i32
  }
  func.func @transform_1(%arg0: i32, %arg1: i32) -> (i32, i32) {
    %c0_i32 = arith.constant 0 : i32
    %c0_i32_0 = arith.constant 0 : i32
    return %arg1, %c0_i32 : i32, i32
  }
  func.func @transform_2(%arg0: i32, %arg1: i32) -> (i32, i32) {
    %c0_i32 = arith.constant 0 : i32
    %c0_i32_0 = arith.constant 0 : i32
    return %arg0, %c0_i32 : i32, i32
  }
  func.func @transform_3(%arg0: i32, %arg1: i32) -> (i32, i32) {
    %c0_i32 = arith.constant 0 : i32
    %c0_i32_0 = arith.constant 0 : i32
    return %arg0, %c0_i32 : i32, i32
  }
  func.func @transform_4(%arg0: i32, %arg1: i32) -> (i32, i32) {
    %c0_i32 = arith.constant 0 : i32
    %c0_i32_0 = arith.constant 0 : i32
    %c0_i32_1 = arith.constant 0 : i32
    return %c0_i32, %c0_i32_0 : i32, i32
  }
  func.func @transform_5(%arg0: i32, %arg1: i32) -> (i32, i32) {
    %c0_i32 = arith.constant 0 : i32
    %c0_i32_0 = arith.constant 0 : i32
    %c0_i32_1 = arith.constant 0 : i32
    return %c0_i32, %c0_i32_0 : i32, i32
  }
  func.func @transform_6(%arg0: i32, %arg1: i32) -> (i32, i32) {
    %c0_i32 = arith.constant 0 : i32
    %c0_i32_0 = arith.constant 0 : i32
    return %arg0, %c0_i32 : i32, i32
  }
}

</mosaic_0001>

<bundles_post_ra>
// kernel: tpu_custom_call.1
= control target key start
LH: loop header
LB: loop body
LE: loop exit
PB: predicated region body
PF: predicated region fallthrough
CT: control target
= control target key end

     0   :  { %11 = vsyncpa [#allocation4], 0  ;;  %s945_s0 = inlined_call_operand.vmem [shape: bf16[64,64], index: 0, kind: input, shape index: {}]   ;;  %s946_s1 = inlined_call_operand.vmem [shape: bf16[64,128], index: 1, kind: input, shape index: {}]   ;;  %s947_s2 = inlined_call_operand.hbm [shape: bf16[64,128], index: 2, kind: input, shape index: {}]   ;;  %s948_s3 = inlined_call_operand.vmem [shape: f32[64,1], index: 3, kind: input, shape index: {}]   ;;  %s949_s4 = inlined_call_operand.hbm [shape: bf16[256,128], index: 4, kind: input, shape index: {}]   ;;  %s950_s5 = inlined_call_operand.vmem [shape: f32[1,128], index: 5, kind: input, shape index: {}]   ;;  %s951_s6 = inlined_call_operand.hbm [shape: bf16[64,128], index: 6, kind: output, shape index: {}]  }
   0x1   :  { %12 = vsyncpa [#allocation7], 0 }
   0x2   :  { %13 = vsyncpa [#allocation5], 0  ;;  %s22_s23 = sshll.u32 %s947_s2, 4  ;;  %s831_s24 = smov [#allocation3]   ;;  %s23_s23 = int_to_ptr.hbm [resolvable:$true] %s22_s23 }
   0x3   :  { %s24_s25 = sshll.u32 %s831_s24, 4  ;;  %s37_s28 = sshll.u32 %s949_s4, 4  ;;  %s25_s25 = int_to_ptr.vmem [resolvable:$true] %s24_s25  ;;  %s38_s28 = int_to_ptr.hbm [resolvable:$true] %s37_s28 }
   0x4   :  { %s832_s29 = smov 64   ;;  %s833_s30 = smov 4  }
   0x5   :  { %30 = dma.hbm_to_vmem [thread:$0]  %s23_s23, 512, %s25_s25, [#allocation4], %s832_s29, %s832_s29, %s833_s30  }
   0x6   :  { %s834_s7 = smov [#allocation6]  }
   0x7   :  { %s39_s8 = sshll.u32 %s834_s7, 4  ;;  %s40_s8 = int_to_ptr.vmem [resolvable:$true] %s39_s8 }
   0x8   :  { %45 = dma.hbm_to_vmem [thread:$0]  %s38_s28, 2048, %s40_s8, [#allocation7], %s832_s29, %s832_s29, %s833_s30  }
   0x9   :  { %825 = dma.done.wait [#allocation4], 512  }
   0xa   :  { %826 = vsyncadd [#allocation4], 4294966784 }
   0xb   :  { %827 = dma.done.wait [#allocation7], 2048  }
   0xc   :  { %828 = vsyncadd [#allocation7], 4294965248  ;;  %v835_v0 = vmov 0   ;;  %v683_v1 = vld [vmem:[%s946_s1 + $0x18] sm:$0xff]  ;;  %v208_v2 = vld [vmem:[%s948_s3 + $0x10] sm:$0xff]  ;;  %vm137_vm0 = vcmask 523264  }
   0xd   :  { %749 = vset.pattern.permute.xlu0 %v835_v0  ;;  %750 = vset.pattern.permute.xlu1 %v835_v0  ;;  %v682_v3 = vld [vmem:[%s946_s1 + $0x10] sm:$0xff]  ;;  %v210_v4 = vld [vmem:[%s948_s3 + $0x20] sm:$0xff]  ;;  %v681_v5 = vld [vmem:[%s946_s1 + $0x8] sm:$0xff]  ;;  %s546_s17 = sshll.u32 %s951_s6, 4  ;;  %s547_s17 = int_to_ptr.hbm [resolvable:$true] %s546_s17 }
   0xe   :  { %751 = vset.pattern.permute.xlu2 %v835_v0  ;;  %154 = vmatpush.bf16.msra.mxu0 %v683_v1  ;;  %v209_v6 = vld [vmem:[%s948_s3 + $0x18] sm:$0xff]  ;;  %v680_v7 = vld [vmem:[%s946_s1] sm:$0xff]  ;;  %v212_v9 = vld [vmem:[%s948_s3 + $0x30] sm:$0xff] }
   0xf   :  { %226 = vperm.xlu0 %749, %v208_v2   ;;  %236 = vperm.xlu1 %750, %v210_v4   ;;  %v676_v8 = vld [vmem:[%s945_s0] sm:$0xff]  ;;  %v211_v10 = vld [vmem:[%s948_s3 + $0x28] sm:$0xff]  ;;  %v213_v12 = vld [vmem:[%s948_s3 + $0x38] sm:$0xff] }
  0x10   :  { %v206_v11 = vld [vmem:[%s948_s3] sm:$0xff]  ;;  %v207_v13 = vld [vmem:[%s948_s3 + $0x8] sm:$0xff]  ;;  %v695_v15 = vld [vmem:[#allocation6 + $0x38] sm:$0xff] }
  0x11   :  { %216 = vperm.xlu2 %751, %v206_v11   ;;  %v677_v14 = vld [vmem:[%s945_s0 + $0x8] sm:$0xff]  ;;  %458 = vmatpush.bf16.msra.mxu1 %v695_v15  ;;  %v694_v16 = vld [vmem:[#allocation6 + $0x30] sm:$0xff]  ;;  %v703_v17 = vld [vmem:[#allocation6 + $0x78] sm:$0xff] }
  0x12   :  { %155 = vmatpush.bf16.msra.mxu0 %v682_v3  ;;  %727 = vmatpush.bf16.msra.mxu3 %v695_v15  ;;  %v702_v18 = vld [vmem:[#allocation6 + $0x70] sm:$0xff]  ;;  %v693_v19 = vld [vmem:[#allocation6 + $0x28] sm:$0xff]  ;;  %v692_v20 = vld [vmem:[#allocation6 + $0x20] sm:$0xff] }
  0x13   :  { %735 = vmatpush.bf16.msra.mxu2 %v703_v17  ;;  %v678_v21 = vld [vmem:[%s945_s0 + $0x10] sm:$0xff]  ;;  %v691_v22 = vld [vmem:[#allocation6 + $0x18] sm:$0xff]  ;;  %v689_v24 = vld [vmem:[#allocation6 + $0x8] sm:$0xff] }
  0x14   :  { %v690_v23 = vld [vmem:[#allocation6 + $0x10] sm:$0xff]  ;;  %v679_v25 = vld [vmem:[%s945_s0 + $0x18] sm:$0xff]  ;;  %v688_v26 = vld [vmem:[#allocation6] sm:$0xff] }
  0x15   :  { %459 = vmatpush.bf16.msra.mxu1 %v694_v16  ;;  %v701_v27 = vld [vmem:[#allocation6 + $0x68] sm:$0xff]  ;;  %v700_v28 = vld [vmem:[#allocation6 + $0x60] sm:$0xff]  ;;  %v699_v29 = vld [vmem:[#allocation6 + $0x58] sm:$0xff] }
  0x16   :  { %156 = vmatpush.bf16.msra.mxu0 %v681_v5  ;;  %728 = vmatpush.bf16.msra.mxu3 %v694_v16  ;;  %v698_v30 = vld [vmem:[#allocation6 + $0x50] sm:$0xff]  ;;  %v697_v31 = vld [vmem:[#allocation6 + $0x48] sm:$0xff]  ;;  %v696_v32 = vld [vmem:[#allocation6 + $0x40] sm:$0xff] }
  0x17   :  { %231 = vperm.xlu0 %749, %v209_v6   ;;  %241 = vperm.xlu1 %750, %v211_v10   ;;  %v685_v33 = vld [vmem:[#allocation3 + $0x8] sm:$0xff]  ;;  %v686_v41 = vld [vmem:[#allocation3 + $0x10] sm:$0xff]  ;;  %v687_v53 = vld [vmem:[#allocation3 + $0x18] sm:$0xff] }
  0x18   :  { %736 = vmatpush.bf16.msra.mxu2 %v702_v18  ;;  %v684_v57 = vld [vmem:[#allocation3] sm:$0xff] }
  0x19   :  { %221 = vperm.xlu2 %751, %v207_v13   ;;  %460 = vmatpush.bf16.msra.mxu1 %v693_v19 }
  0x1a   :  { %157 = vmatpush.bf16.msra.mxu0 %v680_v7  ;;  %729 = vmatpush.bf16.msra.mxu3 %v693_v19 }
  0x1c   :  { %737 = vmatpush.bf16.msra.mxu2 %v701_v27 }
  0x1d   :  { %592 = vmatmul.msk.bf16.vlgmr.msra.gmra.mxu0 %vm137_vm0, %v676_v8  ;;  %461 = vmatpush.bf16.msra.mxu1 %v692_v20 }
  0x1e   :  { %730 = vmatpush.bf16.msra.mxu3 %v692_v20 }
  0x1f   :  { %246 = vperm.xlu0 %749, %v212_v9   ;;  %251 = vperm.xlu1 %750, %v213_v12  }
  0x20   :  { %738 = vmatpush.bf16.msra.mxu2 %v700_v28 }
  0x21   :  { %462 = vmatpush.bf16.msra.mxu1 %v691_v22 }
  0x22   :  { %731 = vmatpush.bf16.msra.mxu3 %v691_v22 }
  0x24   :  { %739 = vmatpush.bf16.msra.mxu2 %v699_v29 }
  0x25   :  { %463 = vmatpush.bf16.msra.mxu1 %v690_v23 }
  0x26   :  { %732 = vmatpush.bf16.msra.mxu3 %v690_v23 }
  0x28   :  { %740 = vmatpush.bf16.msra.mxu2 %v698_v30 }
  0x29   :  { %464 = vmatpush.bf16.msra.mxu1 %v689_v24 }
  0x2a   :  { %733 = vmatpush.bf16.msra.mxu3 %v689_v24 }
  0x2c   :  { %741 = vmatpush.bf16.msra.mxu2 %v697_v31 }
  0x2d   :  { %593 = vmatmul.msk.bf16.gmra.mxu0 %vm137_vm0, %v677_v14  ;;  %465 = vmatpush.bf16.msra.mxu1 %v688_v26 }
  0x2e   :  { %734 = vmatpush.bf16.msra.mxu3 %v688_v26 }
  0x30   :  { %742 = vmatpush.bf16.msra.mxu2 %v696_v32 }
  0x31   :  { %487 = vmatpush.bf16.msrb.mxu1 %v703_v17 }
  0x33   :  { %500 = vmatmul.bf16.vlgmr.msra.gmra.mxu2 %v685_v33 }
  0x35   :  { %488 = vmatpush.bf16.msrb.mxu1 %v702_v18 }
  0x39   :  { %489 = vmatpush.bf16.msrb.mxu1 %v701_v27 }
  0x3d   :  { %594 = vmatmul.msk.bf16.gmra.mxu0 %vm137_vm0, %v678_v21  ;;  %490 = vmatpush.bf16.msrb.mxu1 %v700_v28  ;;  %v752_v21 = vld [vmem:[%s950_s5] ss:$0 sm:$0xff]  ;;  %s836_s5 = smov [#allocation8]  }
  0x3e   :  { %s544_s14 = sshll.u32 %s836_s5, 4  ;;  %s545_s14 = int_to_ptr.vmem [resolvable:$true] %s544_s14 }
  0x41   :  { %491 = vmatpush.bf16.msrb.mxu1 %v699_v29 }
  0x43   :  { %505 = vmatmul.bf16.gmra.mxu2 %v686_v41 }
  0x45   :  { %492 = vmatpush.bf16.msrb.mxu1 %v698_v30 }
  0x49   :  { %493 = vmatpush.bf16.msrb.mxu1 %v697_v31 }
  0x4d   :  { %595 = vmatmul.msk.bf16.gmra.mxu0 %vm137_vm0, %v679_v25  ;;  %494 = vmatpush.bf16.msrb.mxu1 %v696_v32 }
  0x53   :  { %510 = vmatmul.bf16.gmra.mxu2 %v687_v53 }
  0x6b   :  { %v217_v34 = vpop.permute.xlu2 %216 }
  0x73   :  { %v222_v37 = vpop.permute.xlu2 %221 }
  0x81   :  { %v227_v45 = vpop.permute.xlu0 %226  ;;  %v237_v58 = vpop.permute.xlu1 %236 }
  0x89   :  { %v232_v49 = vpop.permute.xlu0 %231  ;;  %v242_v62 = vpop.permute.xlu1 %241 }
  0x91   :  { %v247_v7 = vpop.permute.xlu0 %246  ;;  %v252_v9 = vpop.permute.xlu1 %251 }
  0x9a   :  { %v159_v35 = vpop.f32.mrf.mxu0 }
  0x9b   :  { %v254_v36 = vmul.f32 %v217_v34, %v159_v35 }
  0x9d   :  { %v262_v39 = vpack.c.bf16 %v254_v36, %v254_v36 }
  0x9f   :  { %v286_v43 = vunpack.c.l.b16 %v262_v39 }
  0xa2   :  { %v161_v38 = vpop.f32.mrf.mxu0 }
  0xa3   :  { %v255_v40 = vmul.f32 %v222_v37, %v161_v38 }
  0xa5   :  { %v263_v42 = vpack.c.bf16 %v255_v40, %v255_v40 }
  0xa7   :  { %v287_v44 = vunpack.c.l.b16 %v263_v42 }
  0xa9   :  { %v294_v46 = vpack.c.b16 %v287_v44, %v286_v43 }
  0xaa   :  { %v164_v47 = vpop.f32.mrf.mxu0 }
  0xab   :  { %466 = vmatmul.bf16.vlgmr.msra.gmra.mxu1 %v294_v46  ;;  %v256_v48 = vmul.f32 %v227_v45, %v164_v47 }
  0xad   :  { %v264_v51 = vpack.c.bf16 %v256_v48, %v256_v48 }
  0xaf   :  { %v288_v55 = vunpack.c.l.b16 %v264_v51 }
  0xb2   :  { %v166_v50 = vpop.f32.mrf.mxu0 }
  0xb3   :  { %v257_v52 = vmul.f32 %v232_v49, %v166_v50 }
  0xb5   :  { %v265_v54 = vpack.c.bf16 %v257_v52, %v257_v52 }
  0xb6   :  { %v501_v19 = vpop.f32.mrf.mxu2 }
  0xb7   :  { %v289_v56 = vunpack.c.l.b16 %v265_v54 }
  0xb9   :  { %v295_v59 = vpack.c.b16 %v289_v56, %v288_v55 }
  0xba   :  { %v169_v60 = vpop.f32.mrf.mxu0 }
  0xbb   :  { %471 = vmatmul.bf16.vlgmr.msra.gmra.mxu3 %v295_v59  ;;  %495 = vmatmul.bf16.vlgmr.msrb.gmra.mxu1 %v684_v57  ;;  %v258_v61 = vmul.f32 %v237_v58, %v169_v60 }
  0xbd   :  { %v266_v0 = vpack.c.bf16 %v258_v61, %v258_v61 }
  0xbe   :  { %v503_v27 = vpop.f32.mrf.mxu2 }
  0xbf   :  { %v290_v3 = vunpack.c.l.b16 %v266_v0 }
  0xc2   :  { %v171_v63 = vpop.f32.mrf.mxu0 }
  0xc3   :  { %v259_v1 = vmul.f32 %v242_v62, %v171_v63 }
  0xc5   :  { %v267_v2 = vpack.c.bf16 %v259_v1, %v259_v1 }
  0xc6   :  { %v506_v37 = vpop.f32.mrf.mxu2 }
  0xc7   :  { %v291_v4 = vunpack.c.l.b16 %v267_v2 }
  0xc9   :  { %v296_v5 = vpack.c.b16 %v291_v4, %v290_v3 }
  0xca   :  { %v174_v6 = vpop.f32.mrf.mxu0 }
  0xcb   :  { %476 = vmatmul.bf16.gmra.mxu3 %v296_v5  ;;  %v260_v8 = vmul.f32 %v247_v7, %v174_v6 }
  0xcd   :  { %v268_v11 = vpack.c.bf16 %v260_v8, %v260_v8 }
  0xce   :  { %v508_v43 = vpop.f32.mrf.mxu2 }
  0xcf   :  { %v292_v14 = vunpack.c.l.b16 %v268_v11 }
  0xd2   :  { %v176_v10 = vpop.f32.mrf.mxu0 }
  0xd3   :  { %v261_v12 = vmul.f32 %v252_v9, %v176_v10 }
  0xd5   :  { %v269_v13 = vpack.c.bf16 %v261_v12, %v261_v12 }
  0xd6   :  { %v511_v51 = vpop.f32.mrf.mxu2 }
  0xd7   :  { %v293_v15 = vunpack.c.l.b16 %v269_v13 }
  0xd9   :  { %v297_v16 = vpack.c.b16 %v293_v15, %v292_v14 }
  0xdb   :  { %481 = vmatmul.bf16.gmra.mxu3 %v297_v16 }
  0xde   :  { %v513_v57 = vpop.f32.mrf.mxu2 }
 0x128   :  { %v467_v17 = vpop.f32.mrf.mxu1 }
 0x129   :  { %v468_v22 = vadd.f32 %v752_v21, %v467_v17 }
 0x130   :  { %v469_v18 = vpop.f32.mrf.mxu1 }
 0x131   :  { %v470_v24 = vadd.f32 %v752_v21, %v469_v18 }
 0x138   :  { %v496_v20 = vpop.f32.mrf.mxu1 }
 0x139   :  { %v497_v25 = vadd.f32 %v496_v20, %v468_v22 }
 0x13b   :  { %v516_v29 = vmax.f32 %v497_v25, 0.0 }
 0x13e   :  { %v472_v23 = vpop.f32.mrf.mxu3 }
 0x13f   :  { %v473_v30 = vadd.f32 %v752_v21, %v472_v23 }
 0x140   :  { %v498_v26 = vpop.f32.mrf.mxu1 }
 0x141   :  { %v499_v28 = vadd.f32 %v498_v26, %v470_v24  ;;  %v502_v34 = vadd.f32 %v501_v19, %v473_v30 }
 0x143   :  { %v517_v31 = vmax.f32 %v499_v28, 0.0  ;;  %v518_v38 = vmax.f32 %v502_v34, 0.0 }
 0x145   :  { %v707_v32 = vpack.c.bf16 %v517_v31, %v516_v29 }
 0x146   :  { %v474_v33 = vpop.f32.mrf.mxu3 }
 0x147   :  { %708 = vst [vmem:[#allocation8] sm:$0xff] %v707_v32   ;;  %v475_v35 = vadd.f32 %v752_v21, %v474_v33 }
 0x149   :  { %v504_v36 = vadd.f32 %v503_v27, %v475_v35 }
 0x14b   :  { %v519_v39 = vmax.f32 %v504_v36, 0.0 }
 0x14d   :  { %v712_v40 = vpack.c.bf16 %v519_v39, %v518_v38 }
 0x14e   :  { %v477_v41 = vpop.f32.mrf.mxu3 }
 0x14f   :  { %724 = vst [vmem:[#allocation8 + $0x8] sm:$0xff] %v712_v40   ;;  %v478_v42 = vadd.f32 %v752_v21, %v477_v41 }
 0x151   :  { %v507_v45 = vadd.f32 %v506_v37, %v478_v42 }
 0x153   :  { %v520_v48 = vmax.f32 %v507_v45, 0.0 }
 0x156   :  { %v479_v44 = vpop.f32.mrf.mxu3 }
 0x157   :  { %v480_v46 = vadd.f32 %v752_v21, %v479_v44 }
 0x159   :  { %v509_v47 = vadd.f32 %v508_v43, %v480_v46 }
 0x15b   :  { %v521_v49 = vmax.f32 %v509_v47, 0.0 }
 0x15d   :  { %v717_v50 = vpack.c.bf16 %v521_v49, %v520_v48 }
 0x15e   :  { %v482_v52 = vpop.f32.mrf.mxu3 }
 0x15f   :  { %725 = vst [vmem:[#allocation8 + $0x10] sm:$0xff] %v717_v50   ;;  %v483_v53 = vadd.f32 %v752_v21, %v482_v52 }
 0x161   :  { %v512_v55 = vadd.f32 %v511_v51, %v483_v53 }
 0x163   :  { %v522_v59 = vmax.f32 %v512_v55, 0.0 }
 0x166   :  { %v484_v54 = vpop.f32.mrf.mxu3 }
 0x167   :  { %v485_v56 = vadd.f32 %v752_v21, %v484_v54 }
 0x169   :  { %v514_v58 = vadd.f32 %v513_v57, %v485_v56 }
 0x16b   :  { %v523_v60 = vmax.f32 %v514_v58, 0.0 }
 0x16d   :  { %v722_v61 = vpack.c.bf16 %v523_v60, %v522_v59 }
 0x16f   :  { %726 = vst [vmem:[#allocation8 + $0x18] sm:$0xff] %v722_v61  }
 0x170   :  { %552 = dma.vmem_to_hbm [thread:$0]  %s545_s14, 512, %s547_s17, [#allocation5], %s832_s29, %s832_s29, %s833_s30  }
 0x171   :  { %829 = dma.done.wait [#allocation5], 512  }
 0x172   :  { %830 = vsyncadd [#allocation5], 4294966784 }
 0x173   :  { %557 = vsyncpa [#allocation4], 1 }
 0x174   :  { %558 = vsyncpa [#allocation7], 1 }
 0x175   :  { %559 = vsyncpa [#allocation5], 1 }

</bundles_post_ra>
